<compile_context>
chip_gen: v5e
topology: v5e:2x2
jax: 0.10.0
libtpu: 0.0.40
codegen_flags: <defaults>
</compile_context>

<pallas_src>
import functools
import numpy as np

import jax
import jax.numpy as jnp
from jax import lax
from jax.experimental import pallas as pl
from jax.experimental.pallas import tpu as pltpu


# --------------------------------------------------------------------------- #
# Kernel 1: linear + softmax on the (B, C) pooled embedding -> weights (B, L)
# --------------------------------------------------------------------------- #
def _weights_kernel(emb_ref, wT_ref, b_ref, out_ref):
    logits = jnp.dot(emb_ref[...], wT_ref[...],
                     preferred_element_type=jnp.float32) + b_ref[...]
    m = jnp.max(logits, axis=1, keepdims=True)
    e = jnp.exp(logits - m)
    out_ref[...] = (e / jnp.sum(e, axis=1, keepdims=True)).astype(out_ref.dtype)


# --------------------------------------------------------------------------- #
# Kernel 2: fused bilinear resize + 3x3 'SAME' conv as one big matmul per tile
# --------------------------------------------------------------------------- #
def _resize_conv_kernel(pT_ref, wcT_ref, mT_ref, out_ref, y_ref, *, S2):
    # pT_ref : (1, D, S*S)     weighted prompt for this batch (channels on sublanes)
    # wcT_ref: (9, D, D)       wcT[ky*3+kx] = conv_w[:, :, ky, kx]  (Dout, Din)
    # mT_ref : (9*S*S, THW)    shifted-interpolation matrix tile (contraction x lanes)
    # out_ref: (1, D, THW)     output tile, lane-dense (H*W on lanes)
    # y_ref  : VMEM (D, 9*S*S) tap-transformed prompt; persists across hw tiles
    hw = pl.program_id(1)

    @pl.when(hw == 0)
    def _():
        pT = pT_ref[0]                                       # (D, S*S)
        for k in range(9):                                   # 9 tiny (D,D)x(D,S*S) dots
            y_ref[:, k * S2:(k + 1) * S2] = jnp.dot(
                wcT_ref[k], pT, preferred_element_type=jnp.float32)

    # resize + all 9 conv taps + boundary zero-padding in ONE matmul (K = 9*S*S)
    out_ref[0] = jnp.dot(y_ref[...], mT_ref[...],
                         preferred_element_type=jnp.float32).astype(out_ref.dtype)


# --------------------------------------------------------------------------- #
# Host-side matrix construction (plain numpy, done once per shape)
# --------------------------------------------------------------------------- #
def _bilinear_matrix(out_size, in_size):
    # Row-interpolation matrix matching F.interpolate(mode='bilinear',
    # align_corners=False): out = R @ in along one spatial axis.
    scale = in_size / out_size
    i = np.arange(out_size, dtype=np.float64)
    src = np.maximum(scale * (i + 0.5) - 0.5, 0.0)
    i0 = np.minimum(np.floor(src).astype(np.int64), in_size - 1)
    i1 = np.minimum(i0 + 1, in_size - 1)
    lam1 = src - i0
    lam0 = 1.0 - lam1
    R = np.zeros((out_size, in_size), np.float32)
    R[np.arange(out_size), i0] += lam0.astype(np.float32)
    R[np.arange(out_size), i1] += lam1.astype(np.float32)
    return R


def _shifted_rows(R, d):
    # R'[o] = R[o + d] if 0 <= o + d < rows else 0  (zero-padded conv boundary)
    out = np.zeros_like(R)
    n = R.shape[0]
    for o in range(n):
        if 0 <= o + d < n:
            out[o] = R[o + d]
    return out


def _build_mT(H, W, S):
    # M^T[(k, s, t), (h, w)] = Rh_k[h, s] * Rw_k[w, t] for tap k = ky*3+kx with
    # shift (ky-1, kx-1), so   conv(interp)  ==  Y^T @ M^T   with
    # Y^T[:, k*S*S + s*S + t] = (wc_k^T @ prompt)[:, s, t].
    Rh = _bilinear_matrix(H, S)
    Rw = _bilinear_matrix(W, S)
    blocks = []
    for ky in range(3):
        for kx in range(3):
            Rh_k = _shifted_rows(Rh, ky - 1)                 # (H, S)
            Rw_k = _shifted_rows(Rw, kx - 1)                 # (W, S)
            Mk = np.einsum('hs,wt->sthw', Rh_k, Rw_k).reshape(S * S, H * W)
            blocks.append(Mk)
    return np.concatenate(blocks, axis=0).astype(np.float32)  # (9*S*S, H*W)


# --------------------------------------------------------------------------- #
# Public wrapper
# --------------------------------------------------------------------------- #
def prompt_gen_block(x_nchw, prompt_param, lin_w, lin_b, conv_w):
    B, C, H, W = x_nchw.shape
    _, L, D, S, _ = prompt_param.shape
    f32 = jnp.float32
    S2 = S * S
    HW = H * W

    # ---- global average pool: pure bandwidth work, leave to XLA's fused reduce
    emb = jnp.mean(x_nchw.astype(f32), axis=(2, 3))                        # (B, C)

    # ---- kernel 1: linear + softmax -> prompt weights (B, L)
    lin_wT = lin_w.T.astype(f32)                                           # (C, L)
    lin_b2 = lin_b.reshape(1, L).astype(f32)
    weights = pl.pallas_call(
        _weights_kernel,
        out_shape=jax.ShapeDtypeStruct((B, L), f32),
        grid=(1,),
        in_specs=[
            pl.BlockSpec((B, C), lambda i: (0, 0)),
            pl.BlockSpec((C, L), lambda i: (0, 0)),
            pl.BlockSpec((1, L), lambda i: (0, 0)),
        ],
        out_specs=pl.BlockSpec((B, L), lambda i: (0, 0)),
    )(emb, lin_wT, lin_b2)

    # ---- weighted prompt sum as ONE (B, L) @ (L, D*S*S) matmul (plain JAX glue)
    pT = (weights @ prompt_param[0].reshape(L, D * S2).astype(f32)).reshape(B, D, S2)

    # ---- precomputed shifted interpolation matrix folding resize + 3x3 taps
    # NOTE: at production resolutions (large H*W*S*S) this fused M^T should be
    # replaced by a separable Rh/Rw resize or a K-tiled accumulation to bound the
    # VMEM footprint (v7x has 64 MiB); fine at these shapes.
    mT = jnp.asarray(_build_mT(H, W, S))                                   # (9*S*S, HW)
    wcT = jnp.transpose(conv_w.astype(f32), (2, 3, 0, 1)).reshape(9, D, D)

    # hw tiling: lane-aligned output tiles, >=2 grid points per batch for pipelining
    if HW % 256 == 0 and HW > 256:
        THW = 256
    elif HW % 128 == 0 and HW > 128:
        THW = 128
    else:
        THW = HW

    kern = functools.partial(_resize_conv_kernel, S2=S2)
    out = pl.pallas_call(
        kern,
        out_shape=jax.ShapeDtypeStruct((B, D, HW), f32),
        grid_spec=pltpu.PrefetchScalarGridSpec(
            num_scalar_prefetch=0,
            grid=(B, HW // THW),
            in_specs=[
                pl.BlockSpec((1, D, S2), lambda b, t: (b, 0, 0)),
                pl.BlockSpec((9, D, D), lambda b, t: (0, 0, 0)),
                pl.BlockSpec((9 * S2, THW), lambda b, t: (0, t)),
            ],
            out_specs=pl.BlockSpec((1, D, THW), lambda b, t: (b, 0, t)),
            scratch_shapes=[pltpu.VMEM((D, 9 * S2), f32)],
        ),
        compiler_params=pltpu.CompilerParams(
            dimension_semantics=("parallel", "arbitrary")),
    )(pT, wcT, mT)

    # (B, D, H*W) is already NCHW-flat
    return out.reshape(B, D, H, W)


if __name__ == "__main__":
    # small shapes consistent with the module: lin_dim=C=16, prompt_dim=8,
    # prompt_len=5, prompt_size=8, B=2, H=W=16
    B, C, H, W = 2, 16, 16, 16
    L, D, S = 5, 8, 8

    key = jax.random.PRNGKey(0)
    k1, k2, k3, k4, k5 = jax.random.split(key, 5)
    x = jax.random.normal(k1, (B, C, H, W), jnp.float32)
    prompt_param = jax.random.uniform(k2, (1, L, D, S, S), jnp.float32)
    bound = 1.0 / np.sqrt(C)
    lin_w = jax.random.uniform(k3, (L, C), jnp.float32, -bound, bound)
    lin_b = jax.random.uniform(k4, (L,), jnp.float32, -bound, bound)
    cbound = 1.0 / np.sqrt(D * 9)
    conv_w = jax.random.uniform(k5, (D, D, 3, 3), jnp.float32, -cbound, cbound)

    out = prompt_gen_block(x, prompt_param, lin_w, lin_b, conv_w)
    out = jax.block_until_ready(out)
    assert out.shape == (B, D, H, W)

    # pure-JAX reference check
    emb = x.mean(axis=(2, 3))
    pw = jax.nn.softmax(emb @ lin_w.T + lin_b, axis=1)
    prompt = jnp.einsum('bl,ldst->bdst', pw, prompt_param[0])
    Rh = jnp.asarray(_bilinear_matrix(H, S))
    Rw = jnp.asarray(_bilinear_matrix(W, S))
    interp = jnp.einsum('hs,bdst,wt->bdhw', Rh, prompt, Rw)
    ref = lax.conv_general_dilated(interp, conv_w, (1, 1), 'SAME',
                                   dimension_numbers=('NCHW', 'OIHW', 'NCHW'))
    np.testing.assert_allclose(np.asarray(out), np.asarray(ref), atol=1e-4, rtol=1e-4)

    print("KERNEL_OK")
</pallas_src>

<mosaic_0001>
module attributes {stable_mosaic.version = 11 : i64} {
  func.func @_weights_kernel(%arg0: i32, %arg1: memref<2x16xf32, #tpu.memory_space<vmem>>, %arg2: memref<16x5xf32, #tpu.memory_space<vmem>>, %arg3: memref<1x5xf32, #tpu.memory_space<vmem>>, %arg4: memref<2x5xf32, #tpu.memory_space<vmem>>) attributes {dimension_semantics = [#tpu.dimension_semantics<arbitrary>], iteration_bounds = array<i64: 1>, scalar_prefetch = 0 : i64, scratch_operands = 0 : i64, tpu.core_type = #tpu.core_type<tc>, window_params = [{pipeline_mode = #tpu.pipeline_mode<synchronous>, transform_indices = @transform_0, window_bounds = array<i64: 2, 16>}, {pipeline_mode = #tpu.pipeline_mode<synchronous>, transform_indices = @transform_1, window_bounds = array<i64: 16, 5>}, {pipeline_mode = #tpu.pipeline_mode<synchronous>, transform_indices = @transform_2, window_bounds = array<i64: 1, 5>}, {pipeline_mode = #tpu.pipeline_mode<synchronous>, transform_indices = @transform_3, window_bounds = array<i64: 2, 5>}]} {
    %c0 = arith.constant 0 : index
    %c0_0 = arith.constant 0 : index
    %0 = vector.load %arg1[%c0, %c0_0] : memref<2x16xf32, #tpu.memory_space<vmem>>, vector<2x16xf32>
    %c0_1 = arith.constant 0 : index
    %c0_2 = arith.constant 0 : index
    %1 = vector.load %arg2[%c0_1, %c0_2] : memref<16x5xf32, #tpu.memory_space<vmem>>, vector<16x5xf32>
    %cst = arith.constant dense<0.000000e+00> : vector<2x5xf32>
    %2 = tpu.matmul %0, %1, %cst {dimension_numbers = #tpu.dot_dimension_numbers<[1], [0], [0], [1], [0, 0, 1, 1], [], []>} : vector<2x16xf32>, vector<16x5xf32>, vector<2x5xf32> -> vector<2x5xf32>
    %c0_3 = arith.constant 0 : index
    %c0_4 = arith.constant 0 : index
    %3 = vector.load %arg3[%c0_3, %c0_4] : memref<1x5xf32, #tpu.memory_space<vmem>>, vector<1x5xf32>
    %4 = vector.broadcast %3 : vector<1x5xf32> to vector<2x5xf32>
    %5 = arith.addf %2, %4 : vector<2x5xf32>
    %cst_5 = arith.constant dense<0xFF800000> : vector<2xf32>
    %6 = vector.multi_reduction <maximumf>, %5, %cst_5 [1] : vector<2x5xf32> to vector<2xf32>
    %7 = vector.shape_cast %6 : vector<2xf32> to vector<2x1xf32>
    %8 = vector.broadcast %7 : vector<2x1xf32> to vector<2x5xf32>
    %9 = arith.subf %5, %8 : vector<2x5xf32>
    %10 = math.exp %9 : vector<2x5xf32>
    %cst_6 = arith.constant dense<0.000000e+00> : vector<2xf32>
    %11 = vector.multi_reduction <add>, %10, %cst_6 [1] : vector<2x5xf32> to vector<2xf32>
    %12 = vector.shape_cast %11 : vector<2xf32> to vector<2x1xf32>
    %13 = vector.broadcast %12 : vector<2x1xf32> to vector<2x5xf32>
    %14 = arith.divf %10, %13 : vector<2x5xf32>
    %c0_7 = arith.constant 0 : index
    %c0_8 = arith.constant 0 : index
    %15 = vector.load %arg4[%c0_7, %c0_8] : memref<2x5xf32, #tpu.memory_space<vmem>>, vector<2x5xf32>
    tpu.vector_store %arg4[%c0_7, %c0_8], %14 {strides = array<i32>} : memref<2x5xf32, #tpu.memory_space<vmem>>, vector<2x5xf32>,
    return
  }
  func.func @transform_0(%arg0: i32) -> (i32, i32) {
    %c0_i32 = arith.constant 0 : i32
    %c0_i32_0 = arith.constant 0 : i32
    %c0_i32_1 = arith.constant 0 : i32
    return %c0_i32, %c0_i32_0 : i32, i32
  }
  func.func @transform_1(%arg0: i32) -> (i32, i32) {
    %c0_i32 = arith.constant 0 : i32
    %c0_i32_0 = arith.constant 0 : i32
    %c0_i32_1 = arith.constant 0 : i32
    return %c0_i32, %c0_i32_0 : i32, i32
  }
  func.func @transform_2(%arg0: i32) -> (i32, i32) {
    %c0_i32 = arith.constant 0 : i32
    %c0_i32_0 = arith.constant 0 : i32
    %c0_i32_1 = arith.constant 0 : i32
    return %c0_i32, %c0_i32_0 : i32, i32
  }
  func.func @transform_3(%arg0: i32) -> (i32, i32) {
    %c0_i32 = arith.constant 0 : i32
    %c0_i32_0 = arith.constant 0 : i32
    %c0_i32_1 = arith.constant 0 : i32
    return %c0_i32, %c0_i32_0 : i32, i32
  }
}

</mosaic_0001>

<bundles_post_ra>
// kernel: tpu_custom_call.1
= control target key start
LH: loop header
LB: loop body
LE: loop exit
PB: predicated region body
PF: predicated region fallthrough
CT: control target
= control target key end

     0   :  { %vm22_vm0 = vcmask 130048   ;;  %s160_s0 = inlined_call_operand.vmem [shape: f32[2,16], index: 0, kind: input, shape index: {}]   ;;  %s161_s1 = inlined_call_operand.vmem [shape: f32[16,5], index: 1, kind: input, shape index: {}]   ;;  %s162_s2 = inlined_call_operand.vmem [shape: f32[1,5], index: 2, kind: input, shape index: {}]   ;;  %s163_s3 = inlined_call_operand.hbm [shape: f32[2,5], index: 3, kind: output, shape index: {}]  }
   0x1   :  { %v17_v0 = vld [vmem:[%s161_s1 + $0x8] sm:$0xff]  ;;  %v16_v1 = vld [vmem:[%s161_s1] sm:$0xff] }
   0x2   :  { %v15_v2 = vld [vmem:[%s160_s0] sm:$0x3]  ;;  %40 = vmatpush.msra.mxu0 %v17_v0 }
   0x3   :  { %8 = vsyncpa [#allocation3], 0  ;;  %v90_v3 = vld [vmem:[%s162_s2] ss:$0 sm:$0xff]  ;;  %vm46_vm1 = vcmask 33792   ;;  %s121_s0 = smov [#allocation2]  }
   0x4   :  { %41 = vmatpush.msra.mxu0 %v16_v1  ;;  %s77_s1 = sshll.u32 %s121_s0, 4  ;;  %s79_s21 = sshll.u32 %s163_s3, 4  ;;  %s78_s1 = int_to_ptr.vmem [resolvable:$true] %s77_s1  ;;  %s80_s21 = int_to_ptr.hbm [resolvable:$true] %s79_s21 }
   0x5   :  { %88 = vmatmul.msk.f32.vlgmr.msra.gmra.mxu0 %vm22_vm0, %v15_v2 }
  0x82   :  { %v43_v4 = vpop.f32.mrf.mxu0 }
  0x83   :  { %v44_v5 = vadd.f32 %v90_v3, %v43_v4 }
  0x85   :  { %v47_v6 = vsel %vm46_vm1, %v44_v5, -inf }
  0x86   :  { %48 = vmax.xlane.f32.xlu0 %v47_v6 }
  0xf9   :  { %v49_v7 = vpop.xlane.xlu0 %48 }
  0xfa   :  { %v50_v8 = vsub.f32 %v44_v5, %v49_v7 }
  0xfc   :  { %v51_v9 = vmul.f32 1.442695, %v50_v8 }
  0xfe   :  { %91 = vpow2.f32 %v51_v9 }
 0x104   :  { %v92_v10 = vpop.eup %91 }
 0x105   :  { %v53_v11 = vsel %vm46_vm1, %v92_v10, 0.0 }
 0x106   :  { %54 = vadd.xlane.f32.xlu0 %v53_v11 }
 0x179   :  { %v55_v12 = vpop.xlane.xlu0 %54 }
 0x17a   :  { %93 = vrcp.f32 %v55_v12  ;;  %v67_v16 = vand.u32 2147483648, %v55_v12  ;;  %v65_v18 = vand.u32 2147483647, %v55_v12  ;;  %vm61_vm3 = vweird.f32 %v55_v12 }
 0x17c   :  { %v68_v20 = vor.u32 1.1754944e-38, %v67_v16  ;;  %vm66_vm5 = vcmp.eq.f32.partialorder %v65_v18, 8.507059e+37 }
 0x180   :  { %v94_v13 = vpop.eup %93 }
 0x181   :  { %v57_v14 = vmul.f32 %v94_v13, %v55_v12  ;;  %vm62_vm2 = vweird.f32 %v94_v13 }
 0x182   :  { %vm63_vm4 = vmor %vm61_vm3, %vm62_vm2 }
 0x183   :  { %v58_v15 = vsub.f32 1.0, %v57_v14 }
 0x185   :  { %v59_v17 = vmul.f32 %v94_v13, %v58_v15 }
 0x187   :  { %v60_v19 = vadd.f32 %v94_v13, %v59_v17 }
 0x189   :  { %v64_v21 = vsel %vm63_vm4, %v94_v13, %v60_v19 }
 0x18a   :  { %v69_v22 = vsel %vm66_vm5, %v68_v20, %v64_v21 }
 0x18b   :  { %v70_v23 = vmul.f32 %v92_v10, %v69_v22 }
 0x18d   :  { %71 = vst.msk [vmem:[#allocation2] sm:$0x3] %vm46_vm1, %v70_v23 }
 0x18e   :  { %82 = dma.vmem_to_hbm [thread:$0]  %s78_s1, 32, %s80_s21, [#allocation3]  }
 0x18f   :  { %119 = dma.done.wait [#allocation3], 32  }
 0x190   :  { %120 = vsyncadd [#allocation3], 4294967264 }
 0x191   :  { %87 = vsyncpa [#allocation3], 1 }

</bundles_post_ra>
